<compile_context>
chip_gen: v7x
topology: tpu7x:2x2x1
jax: 0.10.0
libtpu: 0.0.40
codegen_flags: <defaults>
</compile_context>

<pallas_src>
import functools

import jax
import jax.numpy as jnp
from jax.experimental import pallas as pl
from jax.experimental.pallas import tpu as pltpu


def attention_flow_pool_kernel(ctx_ref, qry_ref, wc_ref, wq_ref, b_ref,
                               watt_ref, out_ref):
    # ctx_ref:  (TB, L, Dc)  batch tile of context
    # qry_ref:  (TB, Dq)     batch tile of query
    # wc_ref:   (Dc, H)      w weight, context part (transposed vs torch)
    # wq_ref:   (Dq, H)      w weight, query part
    # b_ref:    (1, H)       w bias
    # watt_ref: (1, H)       query_to_context_attention weight (row layout)
    # out_ref:  (TB, Dc)     attention-pooled context per batch element
    TB, L, Dc = ctx_ref.shape
    H = wc_ref.shape[1]

    ctx = ctx_ref[...]                                        # (TB, L, Dc)

    # energy = relu([ctx, q] @ W + b), split into two MXU matmuls.
    # Single large matmul: M = TB*L rows.
    e = jnp.dot(ctx.reshape(TB * L, Dc), wc_ref[...],
                preferred_element_type=jnp.float32)           # (TB*L, H)
    e = e.reshape(TB, L, H)
    eq = jnp.dot(qry_ref[...], wq_ref[...],
                 preferred_element_type=jnp.float32)          # (TB, H)
    e = e + eq[:, None, :] + b_ref[...][None]                 # broadcast over L
    # dropout: identity at inference
    e = jnp.maximum(e, 0.0)

    # attention logits via VPU multiply + XLU lane-reduce (no (H,1) MXU matmul)
    att = jnp.sum(e * watt_ref[...][None], axis=-1)           # (TB, L)

    # softmax over the sequence dimension (full L resident per step)
    m = jnp.max(att, axis=-1, keepdims=True)
    ex = jnp.exp(att - m)
    score = ex / jnp.sum(ex, axis=-1, keepdims=True)          # (TB, L)

    # pooled context: sum_L score * ctx  (VPU mul + sublane reduce)
    pooled = jnp.sum(ctx * score[:, :, None], axis=1)         # (TB, Dc)
    out_ref[...] = pooled.astype(out_ref.dtype)


def _choose_batch_tile(B, L):
    """Pick a per-step batch tile TB (and padded batch) for the grid."""
    if B <= 8:
        return B, B                      # single step, block == full dim
    tb = 8
    # Grow (multiples of 8) until the energy matmul has ~256 rows, capped.
    while tb * L < 256 and tb < 32:
        tb *= 2
    b_pad = pl.cdiv(B, tb) * tb
    return tb, b_pad


def _attention_flow_pool(context, query, w_ctx, w_qry, w_bias, w_att_row):
    """Pallas call: returns the attention-pooled context, shape (B, Dc)."""
    B, L, Dc = context.shape
    Dq = query.shape[1]
    H = w_ctx.shape[1]

    TB, B_pad = _choose_batch_tile(B, L)
    if B_pad != B:
        pad = B_pad - B
        context = jnp.pad(context, ((0, pad), (0, 0), (0, 0)))
        query = jnp.pad(query, ((0, pad), (0, 0)))

    pooled = pl.pallas_call(
        attention_flow_pool_kernel,
        out_shape=jax.ShapeDtypeStruct((B_pad, Dc), context.dtype),
        grid_spec=pltpu.PrefetchScalarGridSpec(
            num_scalar_prefetch=0,
            grid=(B_pad // TB,),
            in_specs=[
                pl.BlockSpec((TB, L, Dc), lambda b: (b, 0, 0)),   # context tile
                pl.BlockSpec((TB, Dq), lambda b: (b, 0)),         # query tile
                pl.BlockSpec((Dc, H), lambda b: (0, 0)),          # w (ctx part)
                pl.BlockSpec((Dq, H), lambda b: (0, 0)),          # w (qry part)
                pl.BlockSpec((1, H), lambda b: (0, 0)),           # w bias
                pl.BlockSpec((1, H), lambda b: (0, 0)),           # att weight row
            ],
            out_specs=pl.BlockSpec((TB, Dc), lambda b: (b, 0)),
        ),
        compiler_params=pltpu.CompilerParams(
            dimension_semantics=("parallel",)),
    )(context, query, w_ctx, w_qry, w_bias, w_att_row)

    return pooled[:B]


@functools.partial(jax.jit, static_argnames=())
def attention_flow(context, query, w_ctx, w_qry, w_bias, w_att_row):
    """Full forward: concat([context, pooled_rep, query_rep], -1).

    The pure-copy broadcast/concat of the output is delegated to XLA (the
    kernel would otherwise be store-bound on copied bytes)."""
    B, L, Dc = context.shape
    Dq = query.shape[1]
    pooled = _attention_flow_pool(context, query, w_ctx, w_qry, w_bias,
                                  w_att_row)                         # (B, Dc)
    x_rep = jnp.broadcast_to(pooled[:, None, :], (B, L, Dc)).astype(context.dtype)
    q_rep = jnp.broadcast_to(query[:, None, :], (B, L, Dq)).astype(context.dtype)
    return jnp.concatenate([context, x_rep, q_rep], axis=-1)


def reference_attention_flow(context, query, w_ctx, w_qry, w_bias, w_att_row):
    """Pure-JAX reference mirroring the PyTorch forward (eval mode)."""
    B, L, Dc = context.shape
    q_rep = jnp.broadcast_to(query[:, None, :], (B, L, query.shape[1]))
    energy = jnp.concatenate([context, q_rep], axis=-1) @ jnp.concatenate(
        [w_ctx, w_qry], axis=0) + w_bias
    energy = jax.nn.relu(energy)
    attention = jnp.einsum("blh,h->bl", energy, w_att_row[0])   # (B, L)
    score = jax.nn.softmax(attention, axis=1)                   # (B, L)
    x = jnp.einsum("bld,bl->bd", context, score)                # (B, Dc)
    x_rep = jnp.broadcast_to(x[:, None, :], (B, L, Dc))
    return jnp.concatenate([context, x_rep, q_rep], axis=-1)


if __name__ == "__main__":
    # Small shapes consistent with the module: hidden_size = 32
    B, L, hidden = 2, 8, 32
    Dc, Dq = 2 * hidden, hidden          # Dc + Dq == 3 * hidden (matches self.w)
    H = hidden

    key = jax.random.PRNGKey(0)
    k_ctx, k_qry, k_w, k_att = jax.random.split(key, 4)

    context = jax.random.normal(k_ctx, (B, L, Dc), dtype=jnp.float32)
    query = jax.random.normal(k_qry, (B, Dq), dtype=jnp.float32)

    # Deterministic parameter init (trunc_normal std=0.02, zero bias), stored
    # transposed relative to torch.nn.Linear (we use x @ W, W: (in, out)).
    w_full = 0.02 * jax.random.truncated_normal(k_w, -2.0, 2.0, (3 * hidden, H),
                                                dtype=jnp.float32)
    w_ctx, w_qry = w_full[:Dc], w_full[Dc:]
    w_bias = jnp.zeros((1, H), dtype=jnp.float32)
    # query_to_context_attention weight as a (1, H) row (bias=False in torch).
    w_att_row = 0.02 * jax.random.truncated_normal(k_att, -2.0, 2.0, (1, H),
                                                   dtype=jnp.float32)

    out = attention_flow(context, query, w_ctx, w_qry, w_bias, w_att_row)
    out = jax.block_until_ready(out)

    ref = reference_attention_flow(context, query, w_ctx, w_qry, w_bias,
                                   w_att_row)
    assert out.shape == (B, L, 2 * Dc + Dq), out.shape
    assert jnp.allclose(out, ref, atol=1e-5, rtol=1e-5), "mismatch vs reference"

    print("KERNEL_OK")
</pallas_src>

<mosaic_0001>
module attributes {stable_mosaic.version = 11 : i64} {
  func.func @attention_flow_pool_kernel(%arg0: i32, %arg1: memref<2x8x64xf32, #tpu.memory_space<vmem>>, %arg2: memref<2x32xf32, #tpu.memory_space<vmem>>, %arg3: memref<64x32xf32, #tpu.memory_space<vmem>>, %arg4: memref<32x32xf32, #tpu.memory_space<vmem>>, %arg5: memref<1x32xf32, #tpu.memory_space<vmem>>, %arg6: memref<1x32xf32, #tpu.memory_space<vmem>>, %arg7: memref<2x64xf32, #tpu.memory_space<vmem>>) attributes {dimension_semantics = [#tpu.dimension_semantics<parallel>], iteration_bounds = array<i64: 1>, scalar_prefetch = 0 : i64, scratch_operands = 0 : i64, tpu.core_type = #tpu.core_type<tc>, window_params = [{transform_indices = @transform_0, window_bounds = array<i64: 2, 8, 64>}, {transform_indices = @transform_1, window_bounds = array<i64: 2, 32>}, {pipeline_mode = #tpu.pipeline_mode<synchronous>, transform_indices = @transform_2, window_bounds = array<i64: 64, 32>}, {pipeline_mode = #tpu.pipeline_mode<synchronous>, transform_indices = @transform_3, window_bounds = array<i64: 32, 32>}, {pipeline_mode = #tpu.pipeline_mode<synchronous>, transform_indices = @transform_4, window_bounds = array<i64: 1, 32>}, {pipeline_mode = #tpu.pipeline_mode<synchronous>, transform_indices = @transform_5, window_bounds = array<i64: 1, 32>}, {transform_indices = @transform_6, window_bounds = array<i64: 2, 64>}]} {
    %c0 = arith.constant 0 : index
    %c0_0 = arith.constant 0 : index
    %c0_1 = arith.constant 0 : index
    %0 = vector.load %arg1[%c0, %c0_0, %c0_1] : memref<2x8x64xf32, #tpu.memory_space<vmem>>, vector<2x8x64xf32>
    %1 = vector.shape_cast %0 : vector<2x8x64xf32> to vector<16x64xf32>
    %c0_2 = arith.constant 0 : index
    %c0_3 = arith.constant 0 : index
    %2 = vector.load %arg3[%c0_2, %c0_3] : memref<64x32xf32, #tpu.memory_space<vmem>>, vector<64x32xf32>
    %cst = arith.constant dense<0.000000e+00> : vector<16x32xf32>
    %3 = tpu.matmul %1, %2, %cst {dimension_numbers = #tpu.dot_dimension_numbers<[1], [0], [0], [1], [0, 0, 1, 1], [], []>} : vector<16x64xf32>, vector<64x32xf32>, vector<16x32xf32> -> vector<16x32xf32>
    %4 = vector.shape_cast %3 : vector<16x32xf32> to vector<2x8x32xf32>
    %c0_4 = arith.constant 0 : index
    %c0_5 = arith.constant 0 : index
    %5 = vector.load %arg2[%c0_4, %c0_5] : memref<2x32xf32, #tpu.memory_space<vmem>>, vector<2x32xf32>
    %c0_6 = arith.constant 0 : index
    %c0_7 = arith.constant 0 : index
    %6 = vector.load %arg4[%c0_6, %c0_7] : memref<32x32xf32, #tpu.memory_space<vmem>>, vector<32x32xf32>
    %cst_8 = arith.constant dense<0.000000e+00> : vector<2x32xf32>
    %7 = tpu.matmul %5, %6, %cst_8 {dimension_numbers = #tpu.dot_dimension_numbers<[1], [0], [0], [1], [0, 0, 1, 1], [], []>} : vector<2x32xf32>, vector<32x32xf32>, vector<2x32xf32> -> vector<2x32xf32>
    %8 = vector.shape_cast %7 : vector<2x32xf32> to vector<2x1x32xf32>
    %9 = vector.broadcast %8 : vector<2x1x32xf32> to vector<2x8x32xf32>
    %10 = arith.addf %4, %9 : vector<2x8x32xf32>
    %c0_9 = arith.constant 0 : index
    %c0_10 = arith.constant 0 : index
    %11 = vector.load %arg5[%c0_9, %c0_10] : memref<1x32xf32, #tpu.memory_space<vmem>>, vector<1x32xf32>
    %12 = vector.shape_cast %11 : vector<1x32xf32> to vector<1x1x32xf32>
    %13 = vector.broadcast %12 : vector<1x1x32xf32> to vector<2x8x32xf32>
    %14 = arith.addf %10, %13 : vector<2x8x32xf32>
    %cst_11 = arith.constant 0.000000e+00 : f32
    %15 = vector.broadcast %cst_11 : f32 to vector<2x8x32xf32>
    %16 = arith.maximumf %14, %15 : vector<2x8x32xf32>
    %c0_12 = arith.constant 0 : index
    %c0_13 = arith.constant 0 : index
    %17 = vector.load %arg6[%c0_12, %c0_13] : memref<1x32xf32, #tpu.memory_space<vmem>>, vector<1x32xf32>
    %18 = vector.shape_cast %17 : vector<1x32xf32> to vector<1x1x32xf32>
    %19 = vector.broadcast %18 : vector<1x1x32xf32> to vector<2x8x32xf32>
    %20 = arith.mulf %16, %19 : vector<2x8x32xf32>
    %cst_14 = arith.constant dense<0.000000e+00> : vector<2x8xf32>
    %21 = vector.multi_reduction <add>, %20, %cst_14 [2] : vector<2x8x32xf32> to vector<2x8xf32>
    %cst_15 = arith.constant dense<0xFF800000> : vector<2xf32>
    %22 = vector.multi_reduction <maximumf>, %21, %cst_15 [1] : vector<2x8xf32> to vector<2xf32>
    %23 = vector.shape_cast %22 : vector<2xf32> to vector<2x1xf32>
    %24 = vector.broadcast %23 : vector<2x1xf32> to vector<2x8xf32>
    %25 = arith.subf %21, %24 : vector<2x8xf32>
    %26 = math.exp %25 : vector<2x8xf32>
    %cst_16 = arith.constant dense<0.000000e+00> : vector<2xf32>
    %27 = vector.multi_reduction <add>, %26, %cst_16 [1] : vector<2x8xf32> to vector<2xf32>
    %28 = vector.shape_cast %27 : vector<2xf32> to vector<2x1xf32>
    %29 = vector.broadcast %28 : vector<2x1xf32> to vector<2x8xf32>
    %30 = arith.divf %26, %29 : vector<2x8xf32>
    %31 = vector.shape_cast %30 : vector<2x8xf32> to vector<2x8x1xf32>
    %32 = vector.broadcast %31 : vector<2x8x1xf32> to vector<2x8x64xf32>
    %33 = arith.mulf %0, %32 : vector<2x8x64xf32>
    %cst_17 = arith.constant dense<0.000000e+00> : vector<2x64xf32>
    %34 = vector.multi_reduction <add>, %33, %cst_17 [1] : vector<2x8x64xf32> to vector<2x64xf32>
    %c0_18 = arith.constant 0 : index
    %c0_19 = arith.constant 0 : index
    %35 = vector.load %arg7[%c0_18, %c0_19] : memref<2x64xf32, #tpu.memory_space<vmem>>, vector<2x64xf32>
    tpu.vector_store %arg7[%c0_18, %c0_19], %34 {strides = array<i32>} : memref<2x64xf32, #tpu.memory_space<vmem>>, vector<2x64xf32>,
    return
  }
  func.func @transform_0(%arg0: i32) -> (i32, i32, i32) {
    %c0_i32 = arith.constant 0 : i32
    %c0_i32_0 = arith.constant 0 : i32
    %c0_i32_1 = arith.constant 0 : i32
    return %arg0, %c0_i32, %c0_i32_0 : i32, i32, i32
  }
  func.func @transform_1(%arg0: i32) -> (i32, i32) {
    %c0_i32 = arith.constant 0 : i32
    %c0_i32_0 = arith.constant 0 : i32
    return %arg0, %c0_i32 : i32, i32
  }
  func.func @transform_2(%arg0: i32) -> (i32, i32) {
    %c0_i32 = arith.constant 0 : i32
    %c0_i32_0 = arith.constant 0 : i32
    %c0_i32_1 = arith.constant 0 : i32
    return %c0_i32, %c0_i32_0 : i32, i32
  }
  func.func @transform_3(%arg0: i32) -> (i32, i32) {
    %c0_i32 = arith.constant 0 : i32
    %c0_i32_0 = arith.constant 0 : i32
    %c0_i32_1 = arith.constant 0 : i32
    return %c0_i32, %c0_i32_0 : i32, i32
  }
  func.func @transform_4(%arg0: i32) -> (i32, i32) {
    %c0_i32 = arith.constant 0 : i32
    %c0_i32_0 = arith.constant 0 : i32
    %c0_i32_1 = arith.constant 0 : i32
    return %c0_i32, %c0_i32_0 : i32, i32
  }
  func.func @transform_5(%arg0: i32) -> (i32, i32) {
    %c0_i32 = arith.constant 0 : i32
    %c0_i32_0 = arith.constant 0 : i32
    %c0_i32_1 = arith.constant 0 : i32
    return %c0_i32, %c0_i32_0 : i32, i32
  }
  func.func @transform_6(%arg0: i32) -> (i32, i32) {
    %c0_i32 = arith.constant 0 : i32
    %c0_i32_0 = arith.constant 0 : i32
    return %arg0, %c0_i32 : i32, i32
  }
}

</mosaic_0001>

<bundles_post_ra>
// kernel: attention_flow.1
= control target key start
LH: loop header
LB: loop body
LE: loop exit
PB: predicated region body
PF: predicated region fallthrough
CT: control target
= control target key end

     0   :  { %v450_v2 = vmov 0.0|0.0   ;;  %vm451_vm0 = vmmov 0   ;;  %v452_v4 = vmov 0.0   ;;  %vm33_vm1 = vcmask 523264   ;;  %s570_s2 = inlined_call_operand.vmem [shape: f32[64,32], index: 2, kind: input, shape index: {}]   ;;  %s571_s3 = inlined_call_operand.vmem [shape: f32[32,32], index: 3, kind: input, shape index: {}]   ;;  %s572_s0 = inlined_call_operand.vmem [shape: f32[2,8,64], index: 0, kind: input, shape index: {}]   ;;  %s573_s1 = inlined_call_operand.vmem [shape: f32[2,32], index: 1, kind: input, shape index: {}]   ;;  %s574_s4 = inlined_call_operand.vmem [shape: f32[1,32], index: 4, kind: input, shape index: {}]   ;;  %s575_s5 = inlined_call_operand.vmem [shape: f32[1,32], index: 5, kind: input, shape index: {}]   ;;  %s576_s6 = inlined_call_operand.vmem [shape: f32[2,64], index: 6, kind: output, shape index: {}]  }
   0x1   :  { %v25_v0 = vld [vmem:[%s570_s2] sm:$0xff]  ;;  %v26_v1 = vld [vmem:[%s570_s2 + $0x8] sm:$0xff]  ;;  %429 = vmatprep.subr.bf16.mxu1 %v450_v2  ;;  %410 = vmatprep.mubr.msk.f32.mxu1 %vm451_vm0, %v452_v4  ;;  %v27_v7 = vld [vmem:[%s570_s2 + $0x10] sm:$0xff]  ;;  %vm120_vm2 = vcmask 261120   ;;  %v453_v23 = vmov 1966171168   ;;  %v198_v25 = vlaneseq }
   0x2   :  { %v116_v3 = vld [vmem:[%s571_s3] sm:$0xff]  ;;  %v413_v5 = vpack.c.bf16 %v26_v1, %v25_v0  ;;  %v117_v6 = vld [vmem:[%s571_s3 + $0x8] sm:$0xff]  ;;  %v28_v8 = vld [vmem:[%s570_s2 + $0x18] sm:$0xff]  ;;  %v196_v24 = vunpack.c.l.s4 %v453_v23  ;;  %vm267_vm3 = vcmask 1041409   ;;  %vm270_vm4 = vcmask 58368  }
   0x3   :  { %v430_v9 = vpack.c.bf16 %v117_v6, %v116_v3  ;;  %v417_v10 = vpack.c.bf16 %v28_v8, %v27_v7  ;;  %v118_v11 = vld [vmem:[%s571_s3 + $0x10] sm:$0xff]  ;;  %v119_v12 = vld [vmem:[%s571_s3 + $0x18] sm:$0xff]  ;;  %v29_v13 = vld [vmem:[%s570_s2 + $0x20] sm:$0xff]  ;;  %v544_v27 = vshrl.u32 %v198_v25, 7  ;;  %v258_v52 = vand.u32 127, %v198_v25 }
   0x4   :  { %414 = vmatprep.subr.bf16.mxu0 %v413_v5  ;;  %v30_v14 = vld [vmem:[%s570_s2 + $0x28] sm:$0xff]  ;;  %v433_v15 = vpack.c.bf16 %v119_v12, %v118_v11  ;;  %v523_v16 = vld [vmem:[%s572_s0] sm:$0xff]  ;;  %v31_v18 = vld [vmem:[%s570_s2 + $0x30] sm:$0xff]  ;;  %v197_v26 = vunpack.c.0.s8 %v196_v24  ;;  %v454_v60 = vmov 0   ;;  %vm357_vm5 = vcmask 517120  }
   0x5   :  { %416 = vmatpush3.bf16.msra.mxu0 %v413_v5  ;;  %431 = vmatpush3.bf16.msra.mxu1 %v430_v9  ;;  %v421_v17 = vpack.c.bf16 %v30_v14, %v29_v13  ;;  %v32_v19 = vld [vmem:[%s570_s2 + $0x38] sm:$0xff]  ;;  %v115_v20 = vld [vmem:[%s573_s1] sm:$0x3]  ;;  %v540_v22 = vld [vmem:[%s572_s0 + $0x8] sm:$0xff]  ;;  %v219_v32 = vsub.s32 0, %v544_v27  ;;  %v261_v54 = vsub.s32 %v258_v52, %v544_v27  ;;  %v281_v61 = vsub.s32 1, %v544_v27 }
   0x6   :  { %418 = vmatprep.subr.bf16.mxu0 %v417_v10  ;;  %432 = vmatprep.subr.bf16.mxu1 %v450_v2  ;;  %v425_v21 = vpack.c.bf16 %v32_v19, %v31_v18  ;;  %v200_v28 = vsub.s32 %v197_v26, %v544_v27  ;;  %v366_v39 = vld [vmem:[%s574_s4] ss:$0 sm:$0xff] }
   0x7   :  { %399 = vmatprep.mubr.msk.f32.mxu0 %vm33_vm1, %v523_v16  ;;  %v367_v45 = vld [vmem:[%s575_s5] ss:$0 sm:$0xff]  ;;  %441 = vset.pattern.permute.xlu0 %v454_v60 }
   0x8   :  { %440 = vset.pattern.permute.xlu1 %v454_v60 }
   0x9   :  { %420 = vmatpush3.bf16.msra.mxu0 %v417_v10  ;;  %434 = vmatpush3.bf16.msra.mxu1 %v433_v15 }
   0xa   :  { %422 = vmatprep.subr.bf16.mxu0 %v421_v17 }
   0xc   :  { %411 = vmatmul.mubr.msk.f32.vlgmr.msra.gmra.mrb[0].mxu1 %vm120_vm2, %v115_v20 }
   0xd   :  { %424 = vmatpush3.bf16.msra.mxu0 %v421_v17 }
   0xe   :  { %426 = vmatprep.subr.bf16.mxu0 %v425_v21 }
  0x11   :  { %428 = vmatpush3.bf16.msra.mxu0 %v425_v21 }
  0x14   :  { %400 = vmatmul.mubr.msk.f32.vlgmr.msra.gmra.mrb[0].mxu0 %vm33_vm1, %v540_v22 }
  0xdf   :  { %v190_v29 = vpop.f32.mrb[0].mxu1 }
  0xe0   :  { %v201_v30 = vrot.slane %v190_v29, %v200_v28  ;;  %v412_v31 = vpop.f32.mrb[1].mxu1 }
  0xe2   :  { %v202_v33 = vcombine.high %v201_v30, %v201_v30  ;;  %v209_v34 = vrot.slane %v201_v30, %v200_v28 }
  0xe4   :  { %v216_v35 = vrot.slane %v202_v33, %v200_v28  ;;  %v220_v36 = vrot.slane %v209_v34, %v219_v32 }
  0xe6   :  { %v224_v37 = vrot.slane %v216_v35, %v219_v32 }
  0xe7   :  { %v401_v38 = vpop.f32.mrb[0].mxu0 }
  0xe8   :  { %v228_v40 = vadd.f32 %v401_v38, %v224_v37  ;;  %v106_v41 = vpop.f32.mrb[1].mxu0 }
  0xe9   :  { %v227_v42 = vadd.f32 %v220_v36, %v106_v41 }
  0xea   :  { %v237_v43 = vadd.f32 %v366_v39, %v228_v40 }
  0xeb   :  { %v236_v44 = vadd.f32 %v366_v39, %v227_v42 }
  0xec   :  { %v239_v46 = vmax.f32 %v237_v43, 0.0 }
  0xed   :  { %v238_v47 = vmax.f32 %v236_v44, 0.0 }
  0xee   :  { %v248_v50 = vmul.f32 %v367_v45, %v239_v46 }
  0xef   :  { %v247_v48 = vmul.f32 %v367_v45, %v238_v47 }
  0xf0   :  { %v252_v51 = vsel %vm120_vm2, %v248_v50, 0.0 }
  0xf1   :  { %v249_v49 = vsel %vm120_vm2, %v247_v48, 0.0 }
  0xf2   :  { %250 = vadd.xlane.f32.xlu0 %v249_v49 }
  0xf6   :  { %253 = vadd.xlane.f32.xlu0 %v252_v51 }
 0x17f   :  { %v251_v53 = vpop.xlane.xlu0 %250 }
 0x180   :  { %v262_v56 = vrot.slane %v251_v53, %v261_v54 }
 0x183   :  { %v254_v55 = vpop.xlane.xlu0 %253 }
 0x184   :  { %v266_v57 = vrot.slane %v254_v55, %v261_v54 }
 0x186   :  { %v268_v58 = vsel %vm267_vm3, %v266_v57, %v262_v56 }
 0x187   :  { %v271_v59 = vsel %vm270_vm4, %v268_v58, -inf }
 0x188   :  { %272 = vmax.xlane.f32.xlu1 %v271_v59 }
 0x215   :  { %v273_v62 = vpop.xlane.xlu1 %272 }
 0x216   :  { %v278_v63 = vrot.slane %v273_v62, %v219_v32  ;;  %v282_v0 = vrot.slane %v273_v62, %v281_v61 }
 0x218   :  { %v285_v1 = vsub.f32 %v251_v53, %v278_v63  ;;  %v286_v2 = vsub.f32 %v254_v55, %v282_v0 }
 0x21a   :  { %v287_v3 = vmul.f32 1.442695, %v285_v1  ;;  %v289_v4 = vmul.f32 1.442695, %v286_v2 }
 0x21c   :  { %442 = vpow2.f32 %v287_v3 }
 0x21d   :  { %444 = vpow2.f32 %v289_v4 }
 0x226   :  { %v443_v5 = vpop.eup %442 }
 0x227   :  { %v445_v6 = vpop.eup %444  ;;  %294 = vperm.xlu1 %440, %v443_v5  }
 0x228   :  { %297 = vperm.xlu0 %441, %v445_v6  }
 0x2a6   :  { %v295_v7 = vpop.permute.xlu1 %294 }
 0x2a7   :  { %v298_v8 = vpop.permute.xlu0 %297  ;;  %v302_v9 = vrot.slane %v295_v7, %v261_v54 }
 0x2a8   :  { %v306_v10 = vrot.slane %v298_v8, %v261_v54 }
 0x2aa   :  { %v307_v11 = vsel %vm267_vm3, %v306_v10, %v302_v9 }
 0x2ab   :  { %v309_v12 = vsel %vm270_vm4, %v307_v11, 0.0 }
 0x2ac   :  { %310 = vadd.xlane.f32.xlu1 %v309_v12 }
 0x339   :  { %v311_v13 = vpop.xlane.xlu1 %310 }
 0x33a   :  { %v316_v14 = vrot.slane %v311_v13, %v219_v32  ;;  %v320_v15 = vrot.slane %v311_v13, %v281_v61 }
 0x33c   :  { %446 = vrcp.f32 %v316_v14 }
 0x33d   :  { %448 = vrcp.f32 %v320_v15 }
 0x346   :  { %v447_v17 = vpop.eup %446 }
 0x347   :  { %v324_v18 = vmul.f32 %v447_v17, %v443_v5  ;;  %v449_v19 = vpop.eup %448 }
 0x348   :  { %v326_v20 = vmul.f32 %v449_v19, %v445_v6 }
 0x349   :  { %329 = vperm.xlu0 %441, %v324_v18  }
 0x34d   :  { %334 = vperm.xlu0 %441, %v326_v20  }
 0x3c8   :  { %v330_v21 = vpop.permute.xlu0 %329 }
 0x3c9   :  { %v337_v23 = vmul.f32 %v330_v21, %v523_v16 }
 0x3cb   :  { %v339_v24 = vsel %vm33_vm1, %v337_v23, 0.0 }
 0x3cc   :  { %v340_v25 = vrot.slane %v339_v24, 4  ;;  %v335_v26 = vpop.permute.xlu0 %334 }
 0x3cd   :  { %v338_v27 = vmul.f32 %v335_v26, %v540_v22 }
 0x3ce   :  { %v341_v28 = vadd.f32 %v340_v25, %v339_v24 }
 0x3cf   :  { %v346_v29 = vsel %vm33_vm1, %v338_v27, 0.0 }
 0x3d0   :  { %v342_v30 = vrot.slane %v341_v28, 2  ;;  %v347_v31 = vrot.slane %v346_v29, 4 }
 0x3d2   :  { %v343_v32 = vadd.f32 %v342_v30, %v341_v28  ;;  %v348_v33 = vadd.f32 %v347_v31, %v346_v29 }
 0x3d4   :  { %v349_v34 = vrot.slane %v348_v33, 2  ;;  %v344_v35 = vrot.slane %v343_v32, 1 }
 0x3d6   :  { %v350_v36 = vadd.f32 %v349_v34, %v348_v33  ;;  %v345_v38 = vadd.f32 %v344_v35, %v343_v32 }
 0x3d8   :  { %v351_v37 = vrot.slane %v350_v36, 1 }
 0x3da   :  { %v352_v16 = vadd.f32 %v351_v37, %v350_v36 }
 0x3dc   :  { %v355_v39 = vsel %vm267_vm3, %v352_v16, %v345_v38 }
 0x3dd   :  { %358 = vst.msk [vmem:[%s576_s6] sm:$0x3] %vm357_vm5, %v355_v39 }

</bundles_post_ra>
